<compile_context>
chip_gen: v7x
topology: tpu7x:2x2x1
jax: 0.10.0
libtpu: 0.0.40
codegen_flags: <defaults>
</compile_context>

<pallas_src>
import jax
import jax.numpy as jnp
from jax import lax
from jax.experimental import pallas as pl
from jax.experimental.pallas import tpu as pltpu


def _band_weights(w_hwio, W):
    """Fold the horizontal taps + SAME W-padding of a 3x3 conv into banded matrices.

    Returns B of shape (3, W*Cin, W*Cout) with
      B[dy, w_in*Cin + ci, w_out*Cout + co] = w_hwio[dy, dx, ci, co],  dx = w_in - w_out + 1
    (taps that fall off the left/right edge drop out == zero padding in W).
    """
    kh, kw, Ci, Co = w_hwio.shape
    bands = []
    for dy in range(kh):
        B = jnp.zeros((W * Ci, W * Co), w_hwio.dtype)
        for dx in range(kw):
            shift = dx - (kw // 2)                       # -1, 0, +1
            # S[w_in, w_out] = 1  iff  w_in == w_out + shift
            S = jnp.eye(W, k=-shift, dtype=w_hwio.dtype)
            B = B + jnp.kron(S, w_hwio[dy, dx])
        bands.append(B)
    return jnp.stack(bands)


def _double_conv_kernel(x_ref, b1_ref, b2_ref, s1_ref, t1_ref, s2_ref, t2_ref, out_ref):
    """Fused DoubleConv for a block of nb images (lane-folded layout).

    x_ref  : (nb, H, W*Cin)        bf16  input rows (H halo built in-register)
    b1_ref : (3*W*Cin,  W*Cout)    bf16  conv1 banded weights, vertical taps stacked on K
    b2_ref : (3*W*Cout, W*Cout)    bf16  conv2 banded weights
    s*/t*  : (1, W*Cout)           f32   folded BN scale / bias, tiled over W
    out_ref: (nb, H, W*Cout)       f32
    """
    nb, H, WCi = x_ref.shape
    WCo = out_ref.shape[-1]

    # ---- conv1: one fat banded matmul on the MXU (bf16 in, f32 accumulation) ----
    x = x_ref[...]                                               # (nb, H, WCi) bf16
    zx = jnp.zeros((nb, 1, WCi), x.dtype)
    xp = jnp.concatenate([zx, x, zx], axis=1)                    # (nb, H+2, WCi)
    # K-concat of the 3 vertical taps (paid once, not per matmul operand read).
    lhs1 = jnp.concatenate([xp[:, dy:dy + H, :] for dy in range(3)], axis=-1)
    lhs1 = lhs1.reshape(nb * H, 3 * WCi)                         # M = nb*H, K = 3*WCi
    acc1 = jnp.dot(lhs1, b1_ref[...], preferred_element_type=jnp.float32)
    y1 = jnp.maximum(acc1 * s1_ref[0] + t1_ref[0], 0.0)          # BN(eval)+ReLU, f32

    # ---- conv2: single bf16 cast, in-register H halo, one fat banded matmul ----
    y1b = y1.astype(jnp.bfloat16).reshape(nb, H, WCo)            # cast once
    zy = jnp.zeros((nb, 1, WCo), jnp.bfloat16)
    y1p = jnp.concatenate([zy, y1b, zy], axis=1)                 # (nb, H+2, WCo)
    lhs2 = jnp.concatenate([y1p[:, dy:dy + H, :] for dy in range(3)], axis=-1)
    lhs2 = lhs2.reshape(nb * H, 3 * WCo)                         # M = nb*H, K = 3*WCo
    acc2 = jnp.dot(lhs2, b2_ref[...], preferred_element_type=jnp.float32)
    y2 = jnp.maximum(acc2 * s2_ref[0] + t2_ref[0], 0.0)

    out_ref[...] = y2.reshape(nb, H, WCo).astype(out_ref.dtype)


def double_conv(x_nchw, w1, w2, scale1, bias1, scale2, bias2):
    """x_nchw: (N, Cin, H, W) float32.  Returns (N, Cout, H, W) float32."""
    N, Cin, H, W = x_nchw.shape
    Cout = w1.shape[-1]
    WCi, WCo = W * Cin, W * Cout

    # NCHW -> lane-folded rows (N, H, W*Cin), bf16 for the MXU.  No jnp.pad pass:
    # the H halo is built in-register inside the kernel.
    x_rows = (jnp.transpose(x_nchw, (0, 2, 3, 1))
              .reshape(N, H, WCi).astype(jnp.bfloat16))

    # Banded weights with the 3 vertical taps stacked along K.
    b1 = _band_weights(w1, W).reshape(3 * WCi, WCo).astype(jnp.bfloat16)
    b2 = _band_weights(w2, W).reshape(3 * WCo, WCo).astype(jnp.bfloat16)

    s1 = jnp.tile(scale1.astype(jnp.float32), W).reshape(1, WCo)
    t1 = jnp.tile(bias1.astype(jnp.float32), W).reshape(1, WCo)
    s2 = jnp.tile(scale2.astype(jnp.float32), W).reshape(1, WCo)
    t2 = jnp.tile(bias2.astype(jnp.float32), W).reshape(1, WCo)

    # Batch blocking: give the MXU a real M-dim (M = nb*H per matmul).  At the test
    # shapes this is the whole batch in a single grid step.
    target_m = 256
    nb = max(1, min(N, target_m // max(H, 1)))
    while N % nb:
        nb -= 1
    grid = (N // nb,)

    # Scoped-VMEM budget: pipelined blocks (double-buffered) + resident weights
    # (default double-buffered; constant index_map skips the re-fetch) + in-kernel
    # intermediates (lhs1/lhs2/accumulators), clamped to the chip's physical VMEM.
    in_blk = nb * H * WCi * 2
    out_blk = nb * H * WCo * 4
    wts = (3 * WCi * WCo + 3 * WCo * WCo) * 2
    scl = 4 * WCo * 4
    interm = nb * H * (3 * WCi * 2 + 3 * WCo * 2 + 2 * WCo * 4)
    blk_bytes = 2 * in_blk + 2 * out_blk + 2 * (wts + scl) + interm
    vmem_cap = 64 * 1024 * 1024
    try:
        vmem_cap = int(getattr(pltpu.get_tpu_info(), "vmem_capacity_bytes", vmem_cap))
    except Exception:
        pass
    vmem_limit = int(min(vmem_cap - 16 * 1024 * 1024,
                         max(8 * 1024 * 1024, 2 * blk_bytes)))

    out = pl.pallas_call(
        _double_conv_kernel,
        out_shape=jax.ShapeDtypeStruct((N, H, WCo), jnp.float32),
        grid=grid,
        in_specs=[
            pl.BlockSpec((nb, H, WCi), lambda n: (n, 0, 0)),
            pl.BlockSpec((3 * WCi, WCo), lambda n: (0, 0)),
            pl.BlockSpec((3 * WCo, WCo), lambda n: (0, 0)),
            pl.BlockSpec((1, WCo), lambda n: (0, 0)),
            pl.BlockSpec((1, WCo), lambda n: (0, 0)),
            pl.BlockSpec((1, WCo), lambda n: (0, 0)),
            pl.BlockSpec((1, WCo), lambda n: (0, 0)),
        ],
        out_specs=pl.BlockSpec((nb, H, WCo), lambda n: (n, 0, 0)),
        compiler_params=pltpu.CompilerParams(
            dimension_semantics=("parallel",),
            vmem_limit_bytes=vmem_limit),
    )(x_rows, b1, b2, s1, t1, s2, t2)

    # (N, H, W*Cout) -> (N, Cout, H, W)  (kept only to match PyTorch NCHW semantics)
    return jnp.transpose(out.reshape(N, H, W, Cout), (0, 3, 1, 2))


def _reference(x_nchw, w1, w2, s1, b1, s2, b2):
    """Plain-JAX reference mirroring the kernel's mixed precision
    (bf16 matmul inputs, f32 accumulation / BN / ReLU)."""
    f32, bf16 = jnp.float32, jnp.bfloat16
    x = jnp.transpose(x_nchw, (0, 2, 3, 1)).astype(bf16).astype(f32)
    w1 = w1.astype(bf16).astype(f32)
    w2 = w2.astype(bf16).astype(f32)
    dn = ('NHWC', 'HWIO', 'NHWC')
    y = lax.conv_general_dilated(x, w1, (1, 1), 'SAME', dimension_numbers=dn)
    y = jnp.maximum(y * s1 + b1, 0.0)
    y = y.astype(bf16).astype(f32)       # kernel feeds conv2 in bf16
    y = lax.conv_general_dilated(y, w2, (1, 1), 'SAME', dimension_numbers=dn)
    y = jnp.maximum(y * s2 + b2, 0.0)
    return jnp.transpose(y, (0, 3, 1, 2))


if __name__ == "__main__":
    N, Cin, Cout, H, W = 2, 4, 8, 16, 16
    eps = 1e-5

    key = jax.random.PRNGKey(0)
    k_x, k_w1, k_w2, k_g1, k_be1, k_m1, k_v1, k_g2, k_be2, k_m2, k_v2 = \
        jax.random.split(key, 11)

    x = jax.random.normal(k_x, (N, Cin, H, W), jnp.float32)

    # conv weights in HWIO layout (synthetic, deterministic)
    w1 = jax.random.normal(k_w1, (3, 3, Cin, Cout), jnp.float32) * 0.2
    w2 = jax.random.normal(k_w2, (3, 3, Cout, Cout), jnp.float32) * 0.2

    # BatchNorm (eval mode) parameters, folded into per-channel scale/bias
    gamma1 = 1.0 + 0.1 * jax.random.normal(k_g1, (Cout,), jnp.float32)
    beta1 = 0.1 * jax.random.normal(k_be1, (Cout,), jnp.float32)
    mean1 = 0.1 * jax.random.normal(k_m1, (Cout,), jnp.float32)
    var1 = 1.0 + 0.1 * jax.random.uniform(k_v1, (Cout,), jnp.float32)
    gamma2 = 1.0 + 0.1 * jax.random.normal(k_g2, (Cout,), jnp.float32)
    beta2 = 0.1 * jax.random.normal(k_be2, (Cout,), jnp.float32)
    mean2 = 0.1 * jax.random.normal(k_m2, (Cout,), jnp.float32)
    var2 = 1.0 + 0.1 * jax.random.uniform(k_v2, (Cout,), jnp.float32)

    scale1 = gamma1 / jnp.sqrt(var1 + eps)
    bias1 = beta1 - mean1 * scale1
    scale2 = gamma2 / jnp.sqrt(var2 + eps)
    bias2 = beta2 - mean2 * scale2

    out = double_conv(x, w1, w2, scale1, bias1, scale2, bias2)
    out = jax.block_until_ready(out)

    ref = _reference(x, w1, w2, scale1, bias1, scale2, bias2)
    assert out.shape == (N, Cout, H, W)
    # Note: 1e-2 tolerance is intentional — y1 is rounded to bf16 before conv2.
    assert jnp.allclose(out, ref, atol=1e-2, rtol=1e-2), "mismatch vs reference"

    print("KERNEL_OK")
</pallas_src>

<mosaic_0001>
module attributes {stable_mosaic.version = 11 : i64} {
  func.func @_double_conv_kernel(%arg0: i32, %arg1: memref<2x16x64xbf16, #tpu.memory_space<vmem>>, %arg2: memref<192x128xbf16, #tpu.memory_space<vmem>>, %arg3: memref<384x128xbf16, #tpu.memory_space<vmem>>, %arg4: memref<1x128xf32, #tpu.memory_space<vmem>>, %arg5: memref<1x128xf32, #tpu.memory_space<vmem>>, %arg6: memref<1x128xf32, #tpu.memory_space<vmem>>, %arg7: memref<1x128xf32, #tpu.memory_space<vmem>>, %arg8: memref<2x16x128xf32, #tpu.memory_space<vmem>>) attributes {dimension_semantics = [#tpu.dimension_semantics<parallel>], iteration_bounds = array<i64: 1>, scalar_prefetch = 0 : i64, scratch_operands = 0 : i64, tpu.core_type = #tpu.core_type<tc>, window_params = [{transform_indices = @transform_0, window_bounds = array<i64: 2, 16, 64>}, {pipeline_mode = #tpu.pipeline_mode<synchronous>, transform_indices = @transform_1, window_bounds = array<i64: 192, 128>}, {pipeline_mode = #tpu.pipeline_mode<synchronous>, transform_indices = @transform_2, window_bounds = array<i64: 384, 128>}, {pipeline_mode = #tpu.pipeline_mode<synchronous>, transform_indices = @transform_3, window_bounds = array<i64: 1, 128>}, {pipeline_mode = #tpu.pipeline_mode<synchronous>, transform_indices = @transform_4, window_bounds = array<i64: 1, 128>}, {pipeline_mode = #tpu.pipeline_mode<synchronous>, transform_indices = @transform_5, window_bounds = array<i64: 1, 128>}, {pipeline_mode = #tpu.pipeline_mode<synchronous>, transform_indices = @transform_6, window_bounds = array<i64: 1, 128>}, {transform_indices = @transform_7, window_bounds = array<i64: 2, 16, 128>}]} {
    %c0 = arith.constant 0 : index
    %c0_0 = arith.constant 0 : index
    %c0_1 = arith.constant 0 : index
    %0 = vector.load %arg1[%c0, %c0_0, %c0_1] : memref<2x16x64xbf16, #tpu.memory_space<vmem>>, vector<2x16x64xbf16>
    %cst = arith.constant 0.000000e+00 : bf16
    %1 = vector.broadcast %cst : bf16 to vector<2x1x64xbf16>
    %2 = tpu.concatenate %1, %0, %1 in 1 : vector<2x1x64xbf16>, vector<2x16x64xbf16>, vector<2x1x64xbf16> -> vector<2x18x64xbf16>
    %3 = vector.extract_strided_slice %2 {offsets = [0, 0, 0], sizes = [2, 16, 64], strides = [1, 1, 1]} : vector<2x18x64xbf16> to vector<2x16x64xbf16>
    %4 = vector.extract_strided_slice %2 {offsets = [0, 1, 0], sizes = [2, 16, 64], strides = [1, 1, 1]} : vector<2x18x64xbf16> to vector<2x16x64xbf16>
    %5 = vector.extract_strided_slice %2 {offsets = [0, 2, 0], sizes = [2, 16, 64], strides = [1, 1, 1]} : vector<2x18x64xbf16> to vector<2x16x64xbf16>
    %6 = tpu.concatenate %3, %4, %5 in 2 : vector<2x16x64xbf16>, vector<2x16x64xbf16>, vector<2x16x64xbf16> -> vector<2x16x192xbf16>
    %7 = vector.shape_cast %6 : vector<2x16x192xbf16> to vector<32x192xbf16>
    %c0_2 = arith.constant 0 : index
    %c0_3 = arith.constant 0 : index
    %8 = vector.load %arg2[%c0_2, %c0_3] : memref<192x128xbf16, #tpu.memory_space<vmem>>, vector<192x128xbf16>
    %cst_4 = arith.constant dense<0.000000e+00> : vector<32x128xf32>
    %9 = tpu.matmul %7, %8, %cst_4 {dimension_numbers = #tpu.dot_dimension_numbers<[1], [0], [0], [1], [0, 0, 1, 1], [], []>} : vector<32x192xbf16>, vector<192x128xbf16>, vector<32x128xf32> -> vector<32x128xf32>
    %c0_5 = arith.constant 0 : index
    %c0_6 = arith.constant 0 : index
    %10 = vector.load %arg4[%c0_5, %c0_6] : memref<1x128xf32, #tpu.memory_space<vmem>>, vector<1x128xf32>
    %11 = vector.shape_cast %10 : vector<1x128xf32> to vector<128xf32>
    %12 = vector.shape_cast %11 : vector<128xf32> to vector<1x128xf32>
    %13 = vector.broadcast %12 : vector<1x128xf32> to vector<32x128xf32>
    %14 = arith.mulf %9, %13 : vector<32x128xf32>
    %c0_7 = arith.constant 0 : index
    %c0_8 = arith.constant 0 : index
    %15 = vector.load %arg5[%c0_7, %c0_8] : memref<1x128xf32, #tpu.memory_space<vmem>>, vector<1x128xf32>
    %16 = vector.shape_cast %15 : vector<1x128xf32> to vector<128xf32>
    %17 = vector.shape_cast %16 : vector<128xf32> to vector<1x128xf32>
    %18 = vector.broadcast %17 : vector<1x128xf32> to vector<32x128xf32>
    %19 = arith.addf %14, %18 : vector<32x128xf32>
    %cst_9 = arith.constant 0.000000e+00 : f32
    %20 = vector.broadcast %cst_9 : f32 to vector<32x128xf32>
    %21 = arith.maximumf %19, %20 : vector<32x128xf32>
    %22 = arith.truncf %21 : vector<32x128xf32> to vector<32x128xbf16>
    %23 = vector.shape_cast %22 : vector<32x128xbf16> to vector<2x16x128xbf16>
    %cst_10 = arith.constant 0.000000e+00 : bf16
    %24 = vector.broadcast %cst_10 : bf16 to vector<2x1x128xbf16>
    %25 = tpu.concatenate %24, %23, %24 in 1 : vector<2x1x128xbf16>, vector<2x16x128xbf16>, vector<2x1x128xbf16> -> vector<2x18x128xbf16>
    %26 = vector.extract_strided_slice %25 {offsets = [0, 0, 0], sizes = [2, 16, 128], strides = [1, 1, 1]} : vector<2x18x128xbf16> to vector<2x16x128xbf16>
    %27 = vector.extract_strided_slice %25 {offsets = [0, 1, 0], sizes = [2, 16, 128], strides = [1, 1, 1]} : vector<2x18x128xbf16> to vector<2x16x128xbf16>
    %28 = vector.extract_strided_slice %25 {offsets = [0, 2, 0], sizes = [2, 16, 128], strides = [1, 1, 1]} : vector<2x18x128xbf16> to vector<2x16x128xbf16>
    %29 = tpu.concatenate %26, %27, %28 in 2 : vector<2x16x128xbf16>, vector<2x16x128xbf16>, vector<2x16x128xbf16> -> vector<2x16x384xbf16>
    %30 = vector.shape_cast %29 : vector<2x16x384xbf16> to vector<32x384xbf16>
    %c0_11 = arith.constant 0 : index
    %c0_12 = arith.constant 0 : index
    %31 = vector.load %arg3[%c0_11, %c0_12] : memref<384x128xbf16, #tpu.memory_space<vmem>>, vector<384x128xbf16>
    %cst_13 = arith.constant dense<0.000000e+00> : vector<32x128xf32>
    %32 = tpu.matmul %30, %31, %cst_13 {dimension_numbers = #tpu.dot_dimension_numbers<[1], [0], [0], [1], [0, 0, 1, 1], [], []>} : vector<32x384xbf16>, vector<384x128xbf16>, vector<32x128xf32> -> vector<32x128xf32>
    %c0_14 = arith.constant 0 : index
    %c0_15 = arith.constant 0 : index
    %33 = vector.load %arg6[%c0_14, %c0_15] : memref<1x128xf32, #tpu.memory_space<vmem>>, vector<1x128xf32>
    %34 = vector.shape_cast %33 : vector<1x128xf32> to vector<128xf32>
    %35 = vector.shape_cast %34 : vector<128xf32> to vector<1x128xf32>
    %36 = vector.broadcast %35 : vector<1x128xf32> to vector<32x128xf32>
    %37 = arith.mulf %32, %36 : vector<32x128xf32>
    %c0_16 = arith.constant 0 : index
    %c0_17 = arith.constant 0 : index
    %38 = vector.load %arg7[%c0_16, %c0_17] : memref<1x128xf32, #tpu.memory_space<vmem>>, vector<1x128xf32>
    %39 = vector.shape_cast %38 : vector<1x128xf32> to vector<128xf32>
    %40 = vector.shape_cast %39 : vector<128xf32> to vector<1x128xf32>
    %41 = vector.broadcast %40 : vector<1x128xf32> to vector<32x128xf32>
    %42 = arith.addf %37, %41 : vector<32x128xf32>
    %cst_18 = arith.constant 0.000000e+00 : f32
    %43 = vector.broadcast %cst_18 : f32 to vector<32x128xf32>
    %44 = arith.maximumf %42, %43 : vector<32x128xf32>
    %45 = vector.shape_cast %44 : vector<32x128xf32> to vector<2x16x128xf32>
    %c0_19 = arith.constant 0 : index
    %c0_20 = arith.constant 0 : index
    %c0_21 = arith.constant 0 : index
    %46 = vector.load %arg8[%c0_19, %c0_20, %c0_21] : memref<2x16x128xf32, #tpu.memory_space<vmem>>, vector<2x16x128xf32>
    tpu.vector_store %arg8[%c0_19, %c0_20, %c0_21], %45 {strides = array<i32>} : memref<2x16x128xf32, #tpu.memory_space<vmem>>, vector<2x16x128xf32>,
    return
  }
  func.func @transform_0(%arg0: i32) -> (i32, i32, i32) {
    %c0_i32 = arith.constant 0 : i32
    %c0_i32_0 = arith.constant 0 : i32
    %c0_i32_1 = arith.constant 0 : i32
    return %arg0, %c0_i32, %c0_i32_0 : i32, i32, i32
  }
  func.func @transform_1(%arg0: i32) -> (i32, i32) {
    %c0_i32 = arith.constant 0 : i32
    %c0_i32_0 = arith.constant 0 : i32
    %c0_i32_1 = arith.constant 0 : i32
    return %c0_i32, %c0_i32_0 : i32, i32
  }
  func.func @transform_2(%arg0: i32) -> (i32, i32) {
    %c0_i32 = arith.constant 0 : i32
    %c0_i32_0 = arith.constant 0 : i32
    %c0_i32_1 = arith.constant 0 : i32
    return %c0_i32, %c0_i32_0 : i32, i32
  }
  func.func @transform_3(%arg0: i32) -> (i32, i32) {
    %c0_i32 = arith.constant 0 : i32
    %c0_i32_0 = arith.constant 0 : i32
    %c0_i32_1 = arith.constant 0 : i32
    return %c0_i32, %c0_i32_0 : i32, i32
  }
  func.func @transform_4(%arg0: i32) -> (i32, i32) {
    %c0_i32 = arith.constant 0 : i32
    %c0_i32_0 = arith.constant 0 : i32
    %c0_i32_1 = arith.constant 0 : i32
    return %c0_i32, %c0_i32_0 : i32, i32
  }
  func.func @transform_5(%arg0: i32) -> (i32, i32) {
    %c0_i32 = arith.constant 0 : i32
    %c0_i32_0 = arith.constant 0 : i32
    %c0_i32_1 = arith.constant 0 : i32
    return %c0_i32, %c0_i32_0 : i32, i32
  }
  func.func @transform_6(%arg0: i32) -> (i32, i32) {
    %c0_i32 = arith.constant 0 : i32
    %c0_i32_0 = arith.constant 0 : i32
    %c0_i32_1 = arith.constant 0 : i32
    return %c0_i32, %c0_i32_0 : i32, i32
  }
  func.func @transform_7(%arg0: i32) -> (i32, i32, i32) {
    %c0_i32 = arith.constant 0 : i32
    %c0_i32_0 = arith.constant 0 : i32
    %c0_i32_1 = arith.constant 0 : i32
    return %arg0, %c0_i32, %c0_i32_0 : i32, i32, i32
  }
}

</mosaic_0001>

<bundles_post_ra>
// kernel: tpu_custom_call.1
= control target key start
LH: loop header
LB: loop body
LE: loop exit
PB: predicated region body
PF: predicated region fallthrough
CT: control target
= control target key end

     0   :  { %12 = vsyncpa [#allocation3], 0  ;;  %s1162_s0 = inlined_call_operand.hbm [shape: bf16[2,16,64], index: 0, kind: input, shape index: {}]   ;;  %s1163_s1 = inlined_call_operand.hbm [shape: bf16[192,128], index: 1, kind: input, shape index: {}]   ;;  %s1164_s2 = inlined_call_operand.hbm [shape: bf16[384,128], index: 2, kind: input, shape index: {}]   ;;  %s1165_s3 = inlined_call_operand.vmem [shape: f32[1,128], index: 3, kind: input, shape index: {}]   ;;  %s1166_s4 = inlined_call_operand.vmem [shape: f32[1,128], index: 4, kind: input, shape index: {}]   ;;  %s1167_s5 = inlined_call_operand.vmem [shape: f32[1,128], index: 5, kind: input, shape index: {}]   ;;  %s1168_s6 = inlined_call_operand.vmem [shape: f32[1,128], index: 6, kind: input, shape index: {}]   ;;  %s1169_s7 = inlined_call_operand.hbm [shape: f32[2,16,128], index: 7, kind: output, shape index: {}]  }
   0x1   :  { %13 = vsyncpa [#allocation6], 0 }
   0x2   :  { %14 = vsyncpa [#allocation4], 0  ;;  %s975_s24 = smov [#allocation5]   ;;  %s976_s26 = smov [#allocation2]  }
   0x3   :  { %s32_s25 = sshll.u32 %s975_s24, 4  ;;  %s20_s27 = sshll.u32 %s976_s26, 4  ;;  %s33_s25 = int_to_ptr.vmem [resolvable:$true] %s32_s25  ;;  %s1024_s27 = int_to_ptr.vmem [resolvable:$true] %s20_s27 }
   0x4   :  { %s881_s30 = scalar_lea.hbm %s1163_s1, 1536 }
   0x5   :  { %p882_p0 = scmp.ne.s32.totalorder %s1163_s1, %s881_s30  ;;  %p885_p1 = scmp.lt.u32.totalorder %s881_s30, %s1163_s1 }
   0x7   :  { %p887_p2 = pnand %p885_p1, %p882_p0 }
   0x9   :  { %890 = shalt.err (!%p887_p2)
}
   0xa   :  { %s891_s12 = scalar_lea.vmem %s33_s25, 1536  ;;  %p896_p4 = scmp.lt.s32.totalorder %s33_s25, %s33_s25 }
   0xb   :  { %p892_p3 = scmp.ne.s32.totalorder %s33_s25, %s891_s12  ;;  %p897_p5 = scmp.lt.s32.totalorder %s891_s12, %s891_s12 }
   0xd   :  { %p898_p6 = por %p897_p5, %p896_p4 }
   0xf   :  { %p899_p7 = pnand %p898_p6, %p892_p3 }
  0x11   :  { %902 = shalt.err (!%p899_p7)
}
  0x12   :  { %s977_s13 = smov 64   ;;  %s978_s14 = smov 4  }
  0x13   :  { %38 = dma.hbm_to_vmem [thread:$0]  %s1163_s1, 1536, %s33_s25, [#allocation6], %s977_s13, %s977_s13, %s978_s14  }
  0x14   :  { %s903_s19 = scalar_lea.hbm %s1162_s0, 256 }
  0x15   :  { %p904_p8 = scmp.ne.s32.totalorder %s1162_s0, %s903_s19  ;;  %p907_p9 = scmp.lt.u32.totalorder %s903_s19, %s1162_s0 }
  0x17   :  { %p909_p10 = pnand %p907_p9, %p904_p8 }
  0x19   :  { %912 = shalt.err (!%p909_p10)
}
  0x1a   :  { %s913_s24 = scalar_lea.vmem %s1024_s27, 256  ;;  %p918_p12 = scmp.lt.s32.totalorder %s1024_s27, %s1024_s27 }
  0x1b   :  { %p914_p11 = scmp.ne.s32.totalorder %s1024_s27, %s913_s24  ;;  %p919_p13 = scmp.lt.s32.totalorder %s913_s24, %s913_s24 }
  0x1d   :  { %p920_p0 = por %p919_p13, %p918_p12 }
  0x1f   :  { %p921_p1 = pnand %p920_p0, %p914_p11 }
  0x21   :  { %924 = shalt.err (!%p921_p1)
}
  0x22   :  { %26 = dma.hbm_to_vmem [thread:$0]  %s1162_s0, 256, %s1024_s27, [#allocation3], %s977_s13, %s977_s13, %s978_s14  }
  0x23   :  { %s979_s26 = smov [#allocation7]   ;;  %s925_s8 = scalar_lea.hbm %s1164_s2, 3072 }
  0x24   :  { %s44_s28 = sshll.u32 %s979_s26, 4  ;;  %p926_p2 = scmp.ne.s32.totalorder %s1164_s2, %s925_s8  ;;  %s45_s28 = int_to_ptr.vmem [resolvable:$true] %s44_s28 }
  0x25   :  { %p929_p3 = scmp.lt.u32.totalorder %s925_s8, %s1164_s2 }
  0x27   :  { %p931_p4 = pnand %p929_p3, %p926_p2 }
  0x29   :  { %934 = shalt.err (!%p931_p4)
}
  0x2a   :  { %s935_s15 = scalar_lea.vmem %s45_s28, 3072  ;;  %p940_p6 = scmp.lt.s32.totalorder %s45_s28, %s45_s28 }
  0x2b   :  { %p936_p5 = scmp.ne.s32.totalorder %s45_s28, %s935_s15  ;;  %p941_p7 = scmp.lt.s32.totalorder %s935_s15, %s935_s15 }
  0x2d   :  { %p942_p8 = por %p941_p7, %p940_p6 }
  0x2f   :  { %p943_p9 = pnand %p942_p8, %p936_p5 }
  0x31   :  { %946 = shalt.err (!%p943_p9)
}
  0x32   :  { %50 = dma.hbm_to_vmem [thread:$0]  %s1164_s2, 3072, %s45_s28, [#allocation6], %s977_s13, %s977_s13, %s978_s14  }
  0x33   :  { %969 = dma.done.wait [#allocation3], 256  }
  0x34   :  { %970 = vsyncadd [#allocation3], 4294967040 }
  0x35   :  { %971 = dma.done.wait [#allocation6], 4608  }
  0x36   :  { %972 = vsyncadd [#allocation6], 4294962688  ;;  %v980_v0 = vmov 0   ;;  %vm102_vm0 = vsmask.f32 256  ;;  %v843_v1 = vld [vmem:[#allocation2] sm:$0xff]  }
  0x37   :  { %257 = vmatprep.subr.bf16.mxu0 %v980_v0  ;;  %vm101_vm1 = vcmask 1040384   ;;  %v844_v2 = vld [vmem:[#allocation2 + $0x8] sm:$0xff]   ;;  %v84_v3 = vshrl.u32 %v843_v1, 16  ;;  %v87_v4 = vshll.u32 %v843_v1, 16  ;;  %v845_v7 = vld [vmem:[#allocation5] sm:$0xff]   ;;  %v846_v11 = vld [vmem:[#allocation5 + $0x8] sm:$0xff]  }
  0x38   :  { %v91_v5 = vshrl.u32 %v844_v2, 16  ;;  %v94_v6 = vshll.u32 %v844_v2, 16  ;;  %vm1077_vm2 = vmand %vm101_vm1, %vm102_vm0  ;;  %258 = vmatpush1.bf16.msra.mxu0 %v845_v7  ;;  %vm108_vm3 = vsmask.f32 7424  ;;  %v847_v18 = vld [vmem:[#allocation5 + $0x10] sm:$0xff]   ;;  %vm141_vm4 = vcmask 1046528  }
  0x39   :  { %v86_v8 = vrot.slane %v84_v3, 7  ;;  %259 = vmatprep.subr.bf16.mxu0 %v980_v0  ;;  %v848_v28 = vld [vmem:[#allocation5 + $0x18] sm:$0xff]   ;;  %v849_v35 = vld [vmem:[#allocation5 + $0x20] sm:$0xff]   ;;  %vm148_vm5 = vcmask 523264   ;;  %v859_v40 = vld [vmem:[#allocation7 + $0x48] sm:$0xff]   ;;  %s981_s19 = smov [#allocation8]  }
  0x3a   :  { %v93_v10 = vrot.slane %v91_v5, 7  ;;  %v857_v37 = vld [vmem:[#allocation7 + $0x40] sm:$0xff]   ;;  %v850_v41 = vld [vmem:[#allocation5 + $0x28] sm:$0xff]   ;;  %v851_v43 = vld [vmem:[#allocation5 + $0x30] sm:$0xff]   ;;  %s719_s20 = sshll.u32 %s981_s19, 4  ;;  %s720_s20 = int_to_ptr.vmem [resolvable:$true] %s719_s20 }
  0x3b   :  { %v89_v12 = vor.u32 %v87_v4, %v86_v8  ;;  %v106_v13 = vsel %vm1077_vm2, %v86_v8, 0  ;;  %v858_v39 = vld [vmem:[#allocation7] sm:$0xff]   ;;  %776 = vmatprep.subr.bf16.mxu1 %v857_v37  ;;  %v860_v42 = vld [vmem:[#allocation7 + $0x8] sm:$0xff]   ;;  %v852_v44 = vld [vmem:[#allocation5 + $0x38] sm:$0xff]   ;;  %p952_p11 = scmp.lt.s32.totalorder %s720_s20, %s720_s20 }
  0x3c   :  { %v117_v14 = vshll.u32 %v106_v13, 16  ;;  %v96_v15 = vor.u32 %v94_v6, %v93_v10  ;;  %v1086_v16 = vsel %vm1077_vm2, %v93_v10, 0  ;;  %260 = vmatpush1.bf16.msra.mxu0 %v846_v11  ;;  %v143_v33 = vrot.slane %v106_v13, 1  ;;  %777 = vmatpush3.bf16.msra.mxu1 %v858_v39  ;;  %v853_v45 = vld [vmem:[#allocation5 + $0x40] sm:$0xff]   ;;  %v854_v46 = vld [vmem:[#allocation5 + $0x48] sm:$0xff]   ;;  %v855_v47 = vld [vmem:[#allocation5 + $0x50] sm:$0xff]  }
  0x3d   :  { %v1090_v17 = vsel %vm1077_vm2, 0, %v89_v12  ;;  %v129_v22 = vshll.u32 %v1086_v16, 16  ;;  %261 = vmatprep.subr.bf16.mxu0 %v980_v0  ;;  %778 = vmatprep.subr.bf16.mxu1 %v859_v40  ;;  %v856_v48 = vld [vmem:[#allocation5 + $0x58] sm:$0xff]   ;;  %v146_v49 = vrot.slane %v1086_v16, 1  ;;  %v861_v56 = vld [vmem:[#allocation7 + $0x50] sm:$0xff]   ;;  %v865_v60 = vld [vmem:[#allocation7 + $0x60] sm:$0xff]  }
  0x3e   :  { %v110_v19 = vshrl.u32 %v1090_v17, 16  ;;  %v112_v20 = vshll.u32 %v1090_v17, 16  ;;  %v1096_v21 = vsel %vm1077_vm2, 0, %v96_v15  ;;  %v119_v26 = vrot.slane %v117_v14, 1  ;;  %v862_v57 = vld [vmem:[#allocation7 + $0x10] sm:$0xff]   ;;  %v863_v58 = vld [vmem:[#allocation7 + $0x58] sm:$0xff]  }
  0x3f   :  { %v122_v23 = vshrl.u32 %v1096_v21, 16  ;;  %v124_v24 = vshll.u32 %v1096_v21, 16  ;;  %v131_v30 = vrot.slane %v129_v22, 1  ;;  %v142_v31 = vrot.slane %v1090_v17, 1  ;;  %v864_v59 = vld [vmem:[#allocation7 + $0x18] sm:$0xff]   ;;  %v866_v61 = vld [vmem:[#allocation7 + $0x20] sm:$0xff]  }
  0x40   :  { %v114_v25 = vrot.slane %v112_v20, 1  ;;  %262 = vmatpush1.bf16.msra.mxu0 %v847_v18  ;;  %779 = vmatpush3.bf16.msra.mxu1 %v860_v42  ;;  %v145_v50 = vrot.slane %v1096_v21, 1  ;;  %v867_v62 = vld [vmem:[#allocation7 + $0x68] sm:$0xff]   ;;  %v870_v1 = vld [vmem:[#allocation7 + $0x30] sm:$0xff]   ;;  %v871_v2 = vld [vmem:[#allocation7 + $0x78] sm:$0xff]  }
  0x41   :  { %v126_v27 = vrot.slane %v124_v24, 1  ;;  %263 = vmatprep.subr.bf16.mxu0 %v980_v0  ;;  %v144_v36 = vsel %vm141_vm4, %v142_v31, %v143_v33  ;;  %780 = vmatprep.subr.bf16.mxu1 %v861_v56  ;;  %v868_v63 = vld [vmem:[#allocation7 + $0x28] sm:$0xff]   ;;  %v872_v3 = vld [vmem:[#allocation7 + $0x38] sm:$0xff]   ;;  %v873_v4 = vld [vmem:[#allocation7 + $0x80] sm:$0xff]  }
  0x42   :  { %v115_v29 = vor.u32 %v114_v25, %v110_v19  ;;  %746 = vmatprep.mubr.msk.bf16.mxu0 %vm148_vm5, %v144_v36  ;;  %v147_v52 = vsel %vm141_vm4, %v145_v50, %v146_v49  ;;  %v748_v5 = vld [vmem:[%s1165_s3] ss:$0 sm:$0xff] }
  0x43   :  { %v127_v32 = vor.u32 %v126_v27, %v122_v23  ;;  %v749_v7 = vld [vmem:[%s1166_s4] ss:$0 sm:$0xff] }
  0x44   :  { %v120_v34 = vsel %vm108_vm3, %v115_v29, %v119_v26  ;;  %264 = vmatpush1.bf16.msra.mxu0 %v848_v28  ;;  %781 = vmatpush3.bf16.msra.mxu1 %v862_v57 }
  0x45   :  { %133 = vrot.lane.b32.xlu0 %v120_v34, %s977_s13  ;;  %v132_v38 = vsel %vm108_vm3, %v127_v32, %v131_v30  ;;  %265 = vmatprep.subr.bf16.mxu0 %v980_v0 }
  0x46   :  { %782 = vmatprep.subr.bf16.mxu1 %v863_v58 }
  0x48   :  { %266 = vmatpush1.bf16.msra.mxu0 %v849_v35  ;;  %783 = vmatpush3.bf16.msra.mxu1 %v864_v59 }
  0x49   :  { %135 = vrot.lane.b32.xlu0 %v132_v38, %s977_s13  ;;  %267 = vmatprep.subr.bf16.mxu0 %v980_v0 }
  0x4a   :  { %784 = vmatprep.subr.bf16.mxu1 %v865_v60  ;;  %v876_v60 = vld [vmem:[#allocation7 + $0x98] sm:$0xff]  }
  0x4c   :  { %268 = vmatpush1.bf16.msra.mxu0 %v850_v41  ;;  %785 = vmatpush3.bf16.msra.mxu1 %v866_v61  ;;  %v877_v61 = vld [vmem:[#allocation7 + $0xa0] sm:$0xff]  }
  0x4d   :  { %269 = vmatprep.subr.bf16.mxu0 %v980_v0  ;;  %786 = vmatprep.subr.bf16.mxu1 %v867_v62  ;;  %v878_v62 = vld [vmem:[#allocation7 + $0xa8] sm:$0xff]  }
  0x50   :  { %270 = vmatpush1.bf16.msra.mxu0 %v851_v43  ;;  %787 = vmatpush3.bf16.msra.mxu1 %v868_v63  ;;  %v879_v63 = vld [vmem:[#allocation7 + $0xb0] sm:$0xff]  }
  0x51   :  { %271 = vmatprep.subr.bf16.mxu0 %v980_v0 }
  0x54   :  { %272 = vmatpush1.bf16.msra.mxu0 %v852_v44 }
  0x55   :  { %273 = vmatprep.subr.bf16.mxu0 %v980_v0 }
  0x58   :  { %274 = vmatpush1.bf16.msra.mxu0 %v853_v45 }
  0x59   :  { %275 = vmatprep.subr.bf16.mxu0 %v980_v0 }
  0x5c   :  { %276 = vmatpush1.bf16.msra.mxu0 %v854_v46 }
  0x5d   :  { %277 = vmatprep.subr.bf16.mxu0 %v980_v0 }
  0x60   :  { %278 = vmatpush1.bf16.msra.mxu0 %v855_v47 }
  0x61   :  { %279 = vmatprep.subr.bf16.mxu0 %v980_v0  ;;  %v869_v0 = vld [vmem:[#allocation7 + $0x70] sm:$0xff]  }
  0x62   :  { %788 = vmatprep.subr.bf16.mxu1 %v869_v0  ;;  %v880_v0 = vld [vmem:[#allocation7 + $0xb8] sm:$0xff]  }
  0x63   :  { %789 = vmatpush3.bf16.msra.mxu1 %v870_v1 }
  0x64   :  { %280 = vmatpush1.bf16.msra.mxu0 %v856_v48  ;;  %790 = vmatprep.subr.bf16.mxu1 %v871_v2  ;;  %v874_v48 = vld [vmem:[#allocation7 + $0x88] sm:$0xff]  }
  0x67   :  { %791 = vmatpush3.bf16.msra.mxu1 %v872_v3 }
  0x68   :  { %814 = vmatprep.subr.bf16.mxu1 %v873_v4 }
  0xb7   :  { %v134_v51 = vpop.permute.xlu0 %133 }
  0xb8   :  { %v150_v53 = vsel %vm148_vm5, %v1090_v17, %v134_v51 }
  0xb9   :  { %290 = vmatmul.mubr.bf16.vlgmr.msra.gmra.mrb[0].mxu0 %v150_v53 }
  0xba   :  { %747 = vmatprep.mubr.msk.bf16.mxu0 %vm148_vm5, %v147_v52 }
  0xbb   :  { %v136_v54 = vpop.permute.xlu0 %135 }
  0xbc   :  { %v153_v55 = vsel %vm148_vm5, %v1096_v21, %v136_v54 }
  0xc1   :  { %298 = vmatmul.mubr.bf16.gmra.mrb[4].mxu0 %v153_v55  ;;  %v875_v55 = vld [vmem:[#allocation7 + $0x90] sm:$0xff]  }
 0x18c   :  { %v291_v6 = vpop.f32.mrb[0].mxu0 }
 0x18d   :  { %v313_v8 = vmul.f32 %v748_v5, %v291_v6  ;;  %v293_v10 = vpop.f32.mrb[1].mxu0 }
 0x18e   :  { %v294_v11 = vpop.f32.mrb[2].mxu0 }
 0x18f   :  { %v324_v12 = vadd.f32 %v749_v7, %v313_v8  ;;  %v314_v13 = vmul.f32 %v748_v5, %v294_v11  ;;  %v296_v14 = vpop.f32.mrb[3].mxu0 }
 0x191   :  { %v325_v15 = vadd.f32 %v749_v7, %v314_v13  ;;  %v328_v16 = vmax.f32 %v324_v12, 0.0 }
 0x193   :  { %v329_v17 = vmax.f32 %v325_v15, 0.0 }
 0x194   :  { %v299_v18 = vpop.f32.mrb[4].mxu0 }
 0x195   :  { %v332_v19 = vpack.c.bf16 %v329_v17, %v328_v16  ;;  %v315_v20 = vmul.f32 %v748_v5, %v299_v18  ;;  %v301_v21 = vpop.f32.mrb[5].mxu0  ;;  %v774_v18 = vld [vmem:[%s1167_s5] ss:$0 sm:$0xff]  ;;  %s947_s5 = scalar_lea.vmem %s720_s20, 512 }
 0x196   :  { %v302_v22 = vpop.f32.mrb[6].mxu0  ;;  %v775_v21 = vld [vmem:[%s1168_s6] ss:$0 sm:$0xff]  ;;  %p948_p10 = scmp.ne.s32.totalorder %s720_s20, %s947_s5  ;;  %p953_p12 = scmp.lt.s32.totalorder %s947_s5, %s947_s5 }
 0x197   :  { %v335_v23 = vshrl.u32 %v332_v19, 16  ;;  %v326_v24 = vadd.f32 %v749_v7, %v315_v20  ;;  %v316_v25 = vmul.f32 %v748_v5, %v302_v22  ;;  %v304_v26 = vpop.f32.mrb[7].mxu0  ;;  %v338_v28 = vshll.u32 %v332_v19, 16 }
 0x198   :  { %p954_p13 = por %p953_p12, %p952_p11 }
 0x199   :  { %v337_v27 = vrot.slane %v335_v23, 7  ;;  %v330_v29 = vmax.f32 %v326_v24, 0.0  ;;  %v327_v30 = vadd.f32 %v749_v7, %v316_v25 }
 0x19a   :  { %p955_p0 = pnand %p954_p13, %p948_p10 }
 0x19b   :  { %v340_v31 = vor.u32 %v338_v28, %v337_v27  ;;  %v331_v32 = vmax.f32 %v327_v30, 0.0  ;;  %v354_v33 = vsel %vm1077_vm2, %v337_v27, 0 }
 0x19c   :  { %v364_v37 = vshll.u32 %v354_v33, 16  ;;  %v387_v59 = vrot.slane %v354_v33, 1 }
 0x19d   :  { %v333_v34 = vpack.c.bf16 %v331_v32, %v330_v29  ;;  %v352_v35 = vsel %vm1077_vm2, 0, %v340_v31 }
 0x19e   :  { %v359_v36 = vshll.u32 %v352_v35, 16  ;;  %v357_v40 = vshrl.u32 %v352_v35, 16  ;;  %v366_v44 = vrot.slane %v364_v37, 1  ;;  %v386_v57 = vrot.slane %v352_v35, 1 }
 0x19f   :  { %v342_v38 = vshrl.u32 %v333_v34, 16  ;;  %v345_v39 = vshll.u32 %v333_v34, 16 }
 0x1a0   :  { %v361_v41 = vrot.slane %v359_v36, 1  ;;  %v388_v9 = vsel %vm141_vm4, %v386_v57, %v387_v59 }
 0x1a1   :  { %v344_v42 = vrot.slane %v342_v38, 7 }
 0x1a2   :  { %v362_v43 = vor.u32 %v361_v41, %v357_v40 }
 0x1a3   :  { %v347_v45 = vor.u32 %v345_v39, %v344_v42  ;;  %v355_v46 = vsel %vm1077_vm2, %v344_v42, 0 }
 0x1a4   :  { %v367_v47 = vsel %vm108_vm3, %v362_v43, %v366_v44  ;;  %v376_v49 = vshll.u32 %v355_v46, 16  ;;  %v390_v1 = vrot.slane %v355_v46, 1 }
 0x1a5   :  { %v353_v50 = vsel %vm1077_vm2, 0, %v347_v45  ;;  %618 = vmatprep.mubr.bf16.mxu1 %v367_v47 }
 0x1a6   :  { %619 = vmatmul.mubr.bf16.vlgmr.msra.gmra.mrb[0].mxu1 %v352_v35  ;;  %v369_v51 = vshrl.u32 %v353_v50, 16  ;;  %v371_v52 = vshll.u32 %v353_v50, 16  ;;  %v378_v54 = vrot.slane %v376_v49, 1  ;;  %v389_v2 = vrot.slane %v353_v50, 1 }
 0x1a7   :  { %815 = vmatpush3.bf16.msra.mxu1 %v873_v4 }
 0x1a8   :  { %816 = vmatprep.subr.bf16.mxu1 %v874_v48  ;;  %v373_v53 = vrot.slane %v371_v52, 1  ;;  %v391_v3 = vsel %vm141_vm4, %v389_v2, %v390_v1 }
 0x1aa   :  { %v374_v56 = vor.u32 %v373_v53, %v369_v51 }
 0x1ab   :  { %817 = vmatpush3.bf16.msra.mxu1 %v874_v48 }
 0x1ac   :  { %v379_v58 = vsel %vm108_vm3, %v374_v56, %v378_v54  ;;  %818 = vmatprep.subr.bf16.mxu1 %v875_v55 }
 0x1ad   :  { %626 = vmatprep.mubr.bf16.mxu1 %v379_v58 }
 0x1ae   :  { %627 = vmatmul.mubr.bf16.gmra.mrb[4].mxu1 %v353_v50 }
 0x1af   :  { %819 = vmatpush3.bf16.msra.mxu1 %v875_v55  ;;  %830 = vmatprep.mubr.bf16.mxu1 %v388_v9 }
 0x1b0   :  { %820 = vmatprep.subr.bf16.mxu1 %v876_v60 }
 0x1b3   :  { %821 = vmatpush3.bf16.msra.mxu1 %v876_v60 }
 0x1b4   :  { %822 = vmatprep.subr.bf16.mxu1 %v877_v61 }
 0x1b7   :  { %823 = vmatpush3.bf16.msra.mxu1 %v877_v61 }
 0x1b8   :  { %824 = vmatprep.subr.bf16.mxu1 %v878_v62 }
 0x1bb   :  { %825 = vmatpush3.bf16.msra.mxu1 %v878_v62 }
 0x1bc   :  { %826 = vmatprep.subr.bf16.mxu1 %v879_v63 }
 0x1bf   :  { %827 = vmatpush3.bf16.msra.mxu1 %v879_v63 }
 0x1c0   :  { %828 = vmatprep.subr.bf16.mxu1 %v880_v0 }
 0x1c3   :  { %829 = vmatpush3.bf16.msra.mxu1 %v880_v0 }
 0x1c6   :  { %831 = vmatmul.mubr.bf16.vlgmr.msra.gmra.mrb[8].mxu1 %v391_v3 }
 0x279   :  { %v792_v4 = vpop.f32.mrb[0].mxu1 }
 0x27a   :  { %v793_v5 = vpop.f32.mrb[1].mxu1 }
 0x27b   :  { %v794_v6 = vadd.f32 %v793_v5, %v792_v4  ;;  %v795_v7 = vpop.f32.mrb[2].mxu1 }
 0x27c   :  { %v796_v8 = vpop.f32.mrb[3].mxu1 }
 0x27d   :  { %v797_v10 = vadd.f32 %v796_v8, %v795_v7 }
 0x281   :  { %v798_v11 = vpop.f32.mrb[4].mxu1 }
 0x282   :  { %v799_v12 = vpop.f32.mrb[5].mxu1 }
 0x283   :  { %v800_v13 = vadd.f32 %v799_v12, %v798_v11  ;;  %v801_v14 = vpop.f32.mrb[6].mxu1 }
 0x284   :  { %v802_v15 = vpop.f32.mrb[7].mxu1 }
 0x285   :  { %v803_v16 = vadd.f32 %v802_v15, %v801_v14 }
 0x299   :  { %v832_v17 = vpop.f32.mrb[8].mxu1 }
 0x29a   :  { %v678_v19 = vadd.f32 %v832_v17, %v800_v13  ;;  %v669_v20 = vpop.f32.mrb[9].mxu1 }
 0x29b   :  { %v670_v22 = vadd.f32 %v794_v6, %v669_v20  ;;  %v833_v23 = vpop.f32.mrb[10].mxu1 }
 0x29c   :  { %v693_v24 = vmul.f32 %v774_v18, %v678_v19  ;;  %v681_v25 = vadd.f32 %v833_v23, %v803_v16  ;;  %v672_v26 = vpop.f32.mrb[11].mxu1 }
 0x29d   :  { %v691_v27 = vmul.f32 %v774_v18, %v670_v22  ;;  %v673_v28 = vadd.f32 %v797_v10, %v672_v26 }
 0x29e   :  { %v704_v29 = vadd.f32 %v775_v21, %v693_v24  ;;  %v694_v30 = vmul.f32 %v774_v18, %v681_v25 }
 0x29f   :  { %v702_v31 = vadd.f32 %v775_v21, %v691_v27  ;;  %v692_v32 = vmul.f32 %v774_v18, %v673_v28 }
 0x2a0   :  { %v708_v33 = vmax.f32 %v704_v29, 0.0  ;;  %v705_v34 = vadd.f32 %v775_v21, %v694_v30 }
 0x2a1   :  { %v706_v35 = vmax.f32 %v702_v31, 0.0  ;;  %v703_v36 = vadd.f32 %v775_v21, %v692_v32 }
 0x2a2   :  { %712 = vst [vmem:[#allocation8 + $0x10] sm:$0xff] %v708_v33  ;;  %v709_v37 = vmax.f32 %v705_v34, 0.0 }
 0x2a3   :  { %710 = vst [vmem:[#allocation8] sm:$0xff] %v706_v35  ;;  %v707_v38 = vmax.f32 %v703_v36, 0.0 }
 0x2a4   :  { %713 = vst [vmem:[#allocation8 + $0x18] sm:$0xff] %v709_v37 }
 0x2a5   :  { %711 = vst [vmem:[#allocation8 + $0x8] sm:$0xff] %v707_v38 }
 0x2a6   :  { %958 = shalt.err (!%p955_p0)
}
 0x2a7   :  { %s959_s22 = scalar_lea.hbm %s1169_s7, 512 }
 0x2a8   :  { %p960_p1 = scmp.ne.s32.totalorder %s1169_s7, %s959_s22  ;;  %p963_p2 = scmp.lt.u32.totalorder %s959_s22, %s1169_s7 }
 0x2aa   :  { %p965_p3 = pnand %p963_p2, %p960_p1 }
 0x2ac   :  { %968 = shalt.err (!%p965_p3)
}
 0x2ad   :  { %s982_s26 = smov 128   ;;  %s983_s28 = smov 8  }
 0x2ae   :  { %725 = dma.vmem_to_hbm [thread:$0]  %s720_s20, 512, %s1169_s7, [#allocation4], %s982_s26, %s982_s26, %s983_s28  }
 0x2af   :  { %973 = dma.done.wait [#allocation4], 512  }
 0x2b0   :  { %974 = vsyncadd [#allocation4], 4294966784 }
 0x2b1   :  { %729 = vsyncpa [#allocation3], 1 }
 0x2b2   :  { %730 = vsyncpa [#allocation6], 1 }
 0x2b3   :  { %731 = vsyncpa [#allocation4], 1 }

</bundles_post_ra>
